<compile_context>
chip_gen: v6e
topology: v6e:2x2x1
jax: 0.10.0
libtpu: 0.0.40
codegen_flags: <defaults>
</compile_context>

<pallas_src>
import jax
import jax.numpy as jnp
from jax.experimental import pallas as pl
from jax.experimental.pallas import tpu as pltpu


def positional_pooling_kernel(x_ref, trg_ref, src_ref, out_ref):
    # x_ref   : (d, TT, Ts)  one batch, one Tt tile, NCHW layout
    # trg_ref : (TT, E)      target positional embedding rows for this Tt tile
    # src_ref : (Ts, E)      source positional embedding rows
    # out_ref : (d, TT)      lane axis = TT (lane-dense)
    ts = x_ref.shape[-1]

    # Positional kernel K[t, s] = <trg[t], src[s]>  -- contract over E on the MXU,
    # expressed with dot_general so no explicit transpose of src is needed.
    k = jax.lax.dot_general(
        trg_ref[...], src_ref[...],
        dimension_numbers=(((1,), (1,)), ((), ())),
        preferred_element_type=jnp.float32)                    # (TT, Ts), f32

    # Weighted mean over Ts: out[c, t] = (1/Ts) * sum_s K[t, s] * x[c, t, s]
    # (x stays in native dtype; the multiply promotes to f32.)
    acc = jnp.sum(x_ref[...] * k[None, :, :], axis=-1)         # (d, TT), f32
    out_ref[...] = (acc * jnp.float32(1.0 / ts)).astype(out_ref.dtype)


def _choose_tt_block(d, Tt, Ts, itemsize):
    """Pick a Tt block: whole Tt if it fits a modest VMEM budget, else a
    multiple of 128 (keeps the (8,128) rules and a lane-dense output block)."""
    budget = 8 * 1024 * 1024  # per-block budget; pipeline double-buffers this
    if d * Tt * Ts * itemsize <= budget:
        return Tt
    tt = (budget // max(1, d * Ts * itemsize)) // 128 * 128
    tt = max(128, tt)
    return min(tt, Tt)


def positional_pooling(x_nchw, src_emb, trg_emb):
    """x_nchw: (N, d, Tt, Ts); src_emb/trg_emb: (max_length, E) -> (N, d, Tt)."""
    N, d, Tt, Ts = x_nchw.shape
    E = src_emb.shape[1]

    # Embedding lookups with arange indices == leading-row slices (no gather).
    src = src_emb[:Ts]                                          # (Ts, E)
    trg = trg_emb[:Tt]                                          # (Tt, E)

    TT = _choose_tt_block(d, Tt, Ts, jnp.dtype(x_nchw.dtype).itemsize)

    out = pl.pallas_call(
        positional_pooling_kernel,
        out_shape=jax.ShapeDtypeStruct((N, d, Tt), x_nchw.dtype),
        grid_spec=pltpu.PrefetchScalarGridSpec(
            num_scalar_prefetch=0,
            grid=(N, pl.cdiv(Tt, TT)),
            in_specs=[
                # X consumed directly in NCHW: one batch, all channels, a Tt tile.
                pl.BlockSpec((None, d, TT, Ts), lambda n, t: (n, 0, t, 0)),
                pl.BlockSpec((TT, E), lambda n, t: (t, 0)),
                pl.BlockSpec((Ts, E), lambda n, t: (0, 0)),
            ],
            # Output written directly in (N, d, Tt) layout: lane-dense (d, TT) block.
            out_specs=pl.BlockSpec((None, d, TT), lambda n, t: (n, 0, t)),
        ),
        compiler_params=pltpu.CompilerParams(
            dimension_semantics=("parallel", "parallel")),
    )(x_nchw, trg, src)

    return out                                                  # (N, d, Tt) — no transpose


def ref_forward(x_nchw, src_emb, trg_emb):
    """Pure-JAX reference mirroring the PyTorch module's forward."""
    N, d, Tt, Ts = x_nchw.shape
    xp = jnp.transpose(x_nchw, (0, 2, 3, 1))                    # (N, Tt, Ts, d)
    src = src_emb[:Ts]
    trg = trg_emb[:Tt]
    k = trg @ src.T                                             # (Tt, Ts)
    res = xp * k[None, :, :, None]
    res = jnp.mean(res, axis=2)                                 # (N, Tt, d)
    return jnp.transpose(res, (0, 2, 1))                        # (N, d, Tt)


if __name__ == "__main__":
    N, d, Tt, Ts = 2, 4, 16, 16                                 # X: (N, d, Tt, Ts)
    max_length, E = 32, 8                                       # embedding table / emb_size

    key = jax.random.PRNGKey(0)
    kx, ks, kt = jax.random.split(key, 3)

    x = jax.random.normal(kx, (N, d, Tt, Ts), dtype=jnp.float32)
    # Module init fills embedding weights with 1; they are learnable, so a small
    # random perturbation exercises the general forward math.
    src_emb = jnp.ones((max_length, E), jnp.float32) \
        + 0.1 * jax.random.normal(ks, (max_length, E), dtype=jnp.float32)
    trg_emb = jnp.ones((max_length, E), jnp.float32) \
        + 0.1 * jax.random.normal(kt, (max_length, E), dtype=jnp.float32)

    out = positional_pooling(x, src_emb, trg_emb)
    out = jax.block_until_ready(out)

    ref = ref_forward(x, src_emb, trg_emb)
    assert out.shape == (N, d, Tt), out.shape
    assert jnp.allclose(out, ref, rtol=1e-5, atol=1e-5), float(jnp.max(jnp.abs(out - ref)))

    print("KERNEL_OK")
</pallas_src>

<mosaic_0001>
module attributes {stable_mosaic.version = 11 : i64} {
  func.func @positional_pooling_kernel(%arg0: i32, %arg1: i32, %arg2: memref<1x4x16x16xf32, #tpu.memory_space<vmem>>, %arg3: memref<16x8xf32, #tpu.memory_space<vmem>>, %arg4: memref<16x8xf32, #tpu.memory_space<vmem>>, %arg5: memref<1x4x16xf32, #tpu.memory_space<vmem>>) attributes {dimension_semantics = [#tpu.dimension_semantics<parallel>, #tpu.dimension_semantics<parallel>], iteration_bounds = array<i64: 2, 1>, scalar_prefetch = 0 : i64, scratch_operands = 0 : i64, tpu.core_type = #tpu.core_type<tc>, window_params = [{transform_indices = @transform_0, window_bounds = array<i64: 1, 4, 16, 16>}, {transform_indices = @transform_1, window_bounds = array<i64: 16, 8>}, {pipeline_mode = #tpu.pipeline_mode<synchronous>, transform_indices = @transform_2, window_bounds = array<i64: 16, 8>}, {transform_indices = @transform_3, window_bounds = array<i64: 1, 4, 16>}]} {
    %c0 = arith.constant 0 : index
    %c0_0 = arith.constant 0 : index
    %0 = vector.load %arg3[%c0, %c0_0] : memref<16x8xf32, #tpu.memory_space<vmem>>, vector<16x8xf32>
    %c0_1 = arith.constant 0 : index
    %c0_2 = arith.constant 0 : index
    %1 = vector.load %arg4[%c0_1, %c0_2] : memref<16x8xf32, #tpu.memory_space<vmem>>, vector<16x8xf32>
    %cst = arith.constant dense<0.000000e+00> : vector<16x16xf32>
    %2 = tpu.matmul %0, %1, %cst {dimension_numbers = #tpu.dot_dimension_numbers<[1], [1], [0], [0], [0, 0, 1, 0], [], []>} : vector<16x8xf32>, vector<16x8xf32>, vector<16x16xf32> -> vector<16x16xf32>
    %c0_3 = arith.constant 0 : index
    %c0_4 = arith.constant 0 : index
    %c0_5 = arith.constant 0 : index
    %c0_6 = arith.constant 0 : index
    %3 = vector.load %arg2[%c0_3, %c0_4, %c0_5, %c0_6] : memref<1x4x16x16xf32, #tpu.memory_space<vmem>>, vector<1x4x16x16xf32>
    %4 = vector.shape_cast %3 : vector<1x4x16x16xf32> to vector<4x16x16xf32>
    %5 = vector.shape_cast %2 : vector<16x16xf32> to vector<1x16x16xf32>
    %6 = vector.broadcast %5 : vector<1x16x16xf32> to vector<4x16x16xf32>
    %7 = arith.mulf %4, %6 : vector<4x16x16xf32>
    %cst_7 = arith.constant dense<0.000000e+00> : vector<4x16xf32>
    %8 = vector.multi_reduction <add>, %7, %cst_7 [2] : vector<4x16x16xf32> to vector<4x16xf32>
    %cst_8 = arith.constant 6.250000e-02 : f32
    %9 = vector.broadcast %cst_8 : f32 to vector<4x16xf32>
    %10 = arith.mulf %8, %9 : vector<4x16xf32>
    %c0_9 = arith.constant 0 : index
    %c0_10 = arith.constant 0 : index
    %c0_11 = arith.constant 0 : index
    %11 = vector.load %arg5[%c0_9, %c0_10, %c0_11] : memref<1x4x16xf32, #tpu.memory_space<vmem>>, vector<1x4x16xf32>
    %12 = vector.shape_cast %11 : vector<1x4x16xf32> to vector<4x16xf32>
    %13 = vector.shape_cast %10 : vector<4x16xf32> to vector<1x4x16xf32>
    tpu.vector_store %arg5[%c0_9, %c0_10, %c0_11], %13 {strides = array<i32>} : memref<1x4x16xf32, #tpu.memory_space<vmem>>, vector<1x4x16xf32>,
    return
  }
  func.func @transform_0(%arg0: i32, %arg1: i32) -> (i32, i32, i32, i32) {
    %c0_i32 = arith.constant 0 : i32
    %c0_i32_0 = arith.constant 0 : i32
    %c0_i32_1 = arith.constant 0 : i32
    return %arg0, %c0_i32, %arg1, %c0_i32_0 : i32, i32, i32, i32
  }
  func.func @transform_1(%arg0: i32, %arg1: i32) -> (i32, i32) {
    %c0_i32 = arith.constant 0 : i32
    %c0_i32_0 = arith.constant 0 : i32
    return %arg1, %c0_i32 : i32, i32
  }
  func.func @transform_2(%arg0: i32, %arg1: i32) -> (i32, i32) {
    %c0_i32 = arith.constant 0 : i32
    %c0_i32_0 = arith.constant 0 : i32
    %c0_i32_1 = arith.constant 0 : i32
    return %c0_i32, %c0_i32_0 : i32, i32
  }
  func.func @transform_3(%arg0: i32, %arg1: i32) -> (i32, i32, i32) {
    %c0_i32 = arith.constant 0 : i32
    %c0_i32_0 = arith.constant 0 : i32
    return %arg0, %c0_i32, %arg1 : i32, i32, i32
  }
}

</mosaic_0001>

<bundles_post_ra>
// kernel: tpu_custom_call.1
= control target key start
LH: loop header
LB: loop body
LE: loop exit
PB: predicated region body
PF: predicated region fallthrough
CT: control target
= control target key end

     0   :  { %8 = vsyncpa [#allocation3], 0  ;;  %s942_s0 = inlined_call_operand.hbm [shape: f32[2,4,16,16], index: 0, kind: input, shape index: {}]   ;;  %s943_s1 = inlined_call_operand.vmem [shape: f32[16,8], index: 1, kind: input, shape index: {}]   ;;  %s944_s2 = inlined_call_operand.vmem [shape: f32[16,8], index: 2, kind: input, shape index: {}]   ;;  %s945_s3 = inlined_call_operand.hbm [shape: f32[2,4,16], index: 3, kind: output, shape index: {}]  }
   0x1   :  { %10 = vsyncpa [#allocation3 + $0x1], 0 }
   0x2   :  { %11 = vsyncpa [#allocation4], 0 }
   0x3   :  { %13 = vsyncpa [#allocation4 + $0x1], 0  ;;  %s769_s12 = smov 0   ;;  %s771_s13 = smov 0  }
   0x4   :  { %s773_s14 = smov 0   ;;  %s775_s15 = smov 0  }
   0x5   :  { %s777_s16 = smov 0   ;;  %s779_s17 = smov 0  }
   0x6 LB: > { %s540_s18 = sadd.s32 4294967295, %s743_s17   ;;  %s541_s19 = sadd.s32 4294967294, %s743_s17   ;;  %s743_s17 = sphi %s779_s17, %s19_s17   ;;  %s739_s16 = sphi %s777_s16, %s956_s16   ;;  %s735_s15 = sphi %s775_s15, %s955_s15   ;;  %s731_s14 = sphi %s773_s14, %s954_s14   ;;  %s727_s13 = sphi %s771_s13, %s953_s13   ;;  %s723_s12 = sphi %s769_s12, %s952_s12  }
   0x7   : > { %s31_s20 = sadd.s32 1, %s739_s16  ;;  %s40_s21 = sadd.s32 1, %s731_s14 }
   0x8   : > { %p33_p0 = scmp.ge.s32.totalorder %s31_s20, 2  ;;  %p47_p1 = scmp.ne.s32.totalorder %s731_s14, %s727_s13 }
   0x9   : > { %p48_p2 = scmp.eq.s32.totalorder %s743_s17, 0  ;;  %p53_p3 = scmp.ne.s32.totalorder %s727_s13, %s723_s12 }
   0xa   : > { %s958_s20 = smov (%p33_p0, %s31_s20), 0  ;;  %p54_p5 = scmp.eq.s32.totalorder %s540_s18, 0 }
   0xb   : > { %p810_p4 = por %p48_p2, %p47_p1  ;;  %s35_s23 = ssub.s32 %s739_s16, %s958_s20 }
   0xc   : > { %p126_p6 = scmp.eq.s32.totalorder %s540_s18, 1  ;;  %p38_p7 = scmp.eq.s32.totalorder %s35_s23, 0 }
   0xd   : > { %p816_p8 = por %p54_p5, %p53_p3  ;;  %p132_p10 = scmp.eq.s32.totalorder %s541_s19, 1 }
   0xe   : > { %p820_p9 = por %p126_p6, %p47_p1  ;;  %p583_p13 = scmp.lt.s32.totalorder %s743_s17, 2 }
   0xf   : > { %s825_s26 = scalar_select %p38_p7, %s731_s14, %s40_s21  }
  0x10   : > { %p827_p11 = por %p132_p10, %p53_p3  ;;  %s164_s28 = sand.u32 1, %s731_s14  }
  0x11   : > { %s545_s29 = sshll.u32 %s164_s28, 6  ;;  %s559_s30 = sshll.u32 %s739_s16, 10 }
  0x12   : > { %s176_s6 = scalar_lea.hbm %s942_s0, %s559_s30  ;;  %s168_s7 = scalar_lea.vmem [#allocation2], %s545_s29 }
  0x13   : > { %s177_s8 = sshll.u32 %s168_s7, 4  ;;  %p840_p0 = pnand %p583_p13, %p810_p4  ;;  %s178_s8 = int_to_ptr.vmem [resolvable:$true] %s177_s8 }
  0x14   : > { %p548_p1 = scmp.ge.s32.totalorder %s743_s17, 1  ;;  %s165_s10 = scalar_lea.sflag [#allocation3], %s164_s28 }
  0x15   : > { %p637_p2 = pneg %p840_p0  ;;  %s648_s11 = scalar_lea.vmem %s178_s8, 1024 }
  0x16   : > { %p649_p3 = scmp.ne.s32.totalorder %s178_s8, %s648_s11  ;;  %s745_s18 = smov [#allocation2]  }
  0x17   : > { %s653_s19 = sshll.u32 %s745_s18, 4  ;;  %s654_s19 = int_to_ptr.vmem [resolvable:$false] %s653_s19 }
  0x18   : > { %p651_p5 = pnand %p649_p3, %p637_p2  ;;  %s655_s21 = scalar_lea.vmem %s654_s19, 2048 }
  0x19   : > { %p656_p7 = scmp.lt.s32.totalorder %s178_s8, %s654_s19  ;;  %p657_p10 = scmp.lt.s32.totalorder %s655_s21, %s648_s11 }
  0x1a   : > { %p652_p6 = pneg %p651_p5 }
  0x1b   : > { %p658_p12 = por %p657_p10, %p656_p7 }
  0x1d   : > { %p659_p4 = pnand %p658_p12, %p652_p6 }
  0x1f   : > { %662 = shalt.err (!%p659_p4)
}
  0x20   : > { %s746_s22 = smov 128   ;;  %s747_s23 = smov 8  }
  0x21   : > { %578 = dma.hbm_to_vmem [thread:$0]  (!%p840_p0), %s176_s6, 1024, %s178_s8, %s165_s10, %s746_s22, %s746_s22, %s747_s23  }
  0x22   : > { %p185_p13 = scmp.lt.s32.totalorder %s743_s17, 3 }
  0x24   : > { %p186_p2 = pnand %p548_p1, %p185_p13 }
  0x25   : > { %s853_s28 = sand.u32 (!%p186_p2), 1, %s727_s13  }
  0x26   : > { %189 = sbr.rel (%p186_p2) target bundleno = 418 (0x1a2), region = 32  ;;  %s549_s29 = sshll.u32 (!%p186_p2), %s853_s28, 6 }
  0x27   : > { %s192_s30 = scalar_lea.sflag (!%p186_p2), [#allocation3], %s853_s28  ;;  %s857_s4 = scalar_lea.vmem (!%p186_p2), [#allocation2], %s549_s29 }
  0x2b   : > { %714 = dma.done.wait (%p816_p8), %s192_s30, 1024  }
  0x2c   : > { %716 = vsyncadd (%p816_p8), %s192_s30, 4294966272  ;;  %vm234_vm0 = vcmask 64512   ;;  %v233_v0 = vld [vmem:[%s944_s2 + $0x8] sm:$0xff]  ;;  %v232_v1 = vld [vmem:[%s944_s2] sm:$0xff]  ;;  %vm338_vm1 = vcmask 130048   ;;  %v379_v30 = vlaneseq  ;;  %s550_s18 = sshll.u32 %s853_s28, 2 }
  0x2d   : > { %v230_v2 = vld [vmem:[%s943_s1] sm:$0xff]  ;;  %564 = vmatprep.subr.msk.mxu0 %vm234_vm0, %v233_v0  ;;  %v231_v3 = vld [vmem:[%s943_s1 + $0x8] sm:$0xff]  ;;  %v325_v4 = vld [vmem:[%s857_s4 + $0x18] sm:$0xff]  ;;  %vm390_vm2 = vcmask 130112   ;;  %vm419_vm3 = vcmask 1041409   ;;  %vm421_vm4 = vcmask 1042434  }
  0x2e   : > { %568 = vmatprep.mubr.msk.f32.mxu0 %vm234_vm0, %v230_v2  ;;  %565 = vmatpush3.xpose.msk.msra.mxu0 %vm234_vm0, %v233_v0  ;;  %v323_v5 = vld [vmem:[%s857_s4 + $0x8] sm:$0xff]  ;;  %v322_v8 = vld [vmem:[%s857_s4] sm:$0xff]  ;;  %v324_v16 = vld [vmem:[%s857_s4 + $0x10] sm:$0xff]  ;;  %v380_v31 = vand.u32 127, %v379_v30  ;;  %v382_v34 = vshrl.u32 %v379_v30, 7  ;;  %s556_s19 = sshll.u32 %s735_s15, 6 }
  0x2f   : > { %566 = vmatprep.subr.msk.mxu0 %vm234_vm0, %v232_v1  ;;  %v327_v7 = vld [vmem:[%s857_s4 + $0x28] sm:$0xff]  ;;  %v326_v17 = vld [vmem:[%s857_s4 + $0x20] sm:$0xff]  ;;  %v329_v22 = vld [vmem:[%s857_s4 + $0x38] sm:$0xff]  ;;  %s222_s21 = scalar_lea.vmem [#allocation5], %s550_s18  ;;  %vm423_vm5 = vcmask 1043459   ;;  %vm426_vm6 = vcmask 125952   ;;  %s900_s30 = scalar_lea.hbm %s945_s3, %s556_s19 }
  0x30   : > { %v328_v23 = vld [vmem:[%s857_s4 + $0x30] sm:$0xff]  ;;  %v385_v35 = vadd.s32 4294967288, %v380_v31  ;;  %v383_v38 = vsub.s32 %v380_v31, %v382_v34  ;;  %s443_s22 = sshll.u32 %s222_s21, 4  ;;  %s429_s4 = scalar_lea.sflag [#allocation4], %s853_s28  ;;  %s444_s22 = int_to_ptr.vmem [resolvable:$true] %s443_s22 }
  0x31   : > { %s663_s15 = scalar_lea.vmem %s444_s22, 64  ;;  %s748_s5 = smov [#allocation5]  }
  0x32   : > { %567 = vmatpush3.xpose.msk.msra.mxu0 %vm234_vm0, %v232_v1  ;;  %v388_v40 = vsub.s32 %v385_v35, %v382_v34  ;;  %p664_p8 = scmp.ne.s32.totalorder %s444_s22, %s663_s15  ;;  %s667_s6 = sshll.u32 %s748_s5, 4  ;;  %s668_s6 = int_to_ptr.vmem [resolvable:$false] %s667_s6 }
  0x33   : > { %s669_s7 = scalar_lea.vmem %s668_s6, 128  ;;  %p670_p1 = scmp.lt.s32.totalorder %s444_s22, %s668_s6 }
  0x34   : > { %p665_p12 = pnand %p664_p8, %p820_p9  ;;  %p671_p3 = scmp.lt.s32.totalorder %s669_s7, %s663_s15 }
  0x35   : > { %569 = vmatmul.mubr.msk.f32.vlgmr.msra.gmra.mxu0 %vm234_vm0, %v231_v3 }
  0x36   : > { %p666_p0 = pneg %p665_p12  ;;  %p672_p5 = por %p671_p3, %p670_p1 }
  0x38   : > { %p673_p6 = pnand %p672_p5, %p666_p0 }
  0xf5   : > { %v570_v6 = vpop.f32.mrf.mxu0 }
  0xf6   : > { %v333_v9 = vmul.f32 %v570_v6, %v325_v4  ;;  %v331_v10 = vmul.f32 %v570_v6, %v323_v5  ;;  %v335_v14 = vmul.f32 %v570_v6, %v327_v7  ;;  %v337_v26 = vmul.f32 %v570_v6, %v329_v22 }
  0xf7   : > { %v313_v11 = vpop.f32.mrf.mxu0 }
  0xf8   : > { %v348_v12 = vsel %vm338_vm1, %v333_v9, 0.0  ;;  %v342_v13 = vsel %vm338_vm1, %v331_v10, 0.0  ;;  %v330_v15 = vmul.f32 %v322_v8, %v313_v11  ;;  %v354_v18 = vsel %vm338_vm1, %v335_v14, 0.0 }
  0xf9   : > { %349 = vadd.xlane.f32.xlu1 %v348_v12  ;;  %343 = vadd.xlane.f32.xlu0 %v342_v13  ;;  %v332_v20 = vmul.f32 %v324_v16, %v313_v11  ;;  %v334_v21 = vmul.f32 %v326_v17, %v313_v11  ;;  %v336_v27 = vmul.f32 %v328_v23, %v313_v11  ;;  %v360_v28 = vsel %vm338_vm1, %v337_v26, 0.0 }
  0xfa   : > { %v339_v19 = vsel %vm338_vm1, %v330_v15, 0.0 }
  0xfb   : > { %v345_v24 = vsel %vm338_vm1, %v332_v20, 0.0  ;;  %v351_v25 = vsel %vm338_vm1, %v334_v21, 0.0  ;;  %v357_v29 = vsel %vm338_vm1, %v336_v27, 0.0 }
  0xfd   : > { %355 = vadd.xlane.f32.xlu1 %v354_v18  ;;  %340 = vadd.xlane.f32.xlu0 %v339_v19 }
 0x101   : > { %346 = vadd.xlane.f32.xlu1 %v345_v24  ;;  %352 = vadd.xlane.f32.xlu0 %v351_v25 }
 0x105   : > { %361 = vadd.xlane.f32.xlu1 %v360_v28  ;;  %358 = vadd.xlane.f32.xlu0 %v357_v29 }
 0x182   : > { %v350_v32 = vpop.xlane.xlu1 %349  ;;  %v344_v33 = vpop.xlane.xlu0 %343 }
 0x183   : > { %v366_v41 = vmul.f32 0.0625, %v350_v32  ;;  %v364_v42 = vmul.f32 0.0625, %v344_v33 }
 0x185   : > { %v399_v49 = vrot.slane %v366_v41, %v388_v40  ;;  %v389_v50 = vrot.slane %v364_v42, %v388_v40 }
 0x186   : > { %v356_v36 = vpop.xlane.xlu1 %355  ;;  %v341_v37 = vpop.xlane.xlu0 %340 }
 0x187   : > { %v363_v39 = vmul.f32 0.0625, %v341_v37  ;;  %v368_v43 = vmul.f32 0.0625, %v356_v36 }
 0x189   : > { %v384_v46 = vrot.slane %v363_v39, %v383_v38  ;;  %v408_v53 = vrot.slane %v368_v43, %v388_v40 }
 0x18a   : > { %v347_v44 = vpop.xlane.xlu1 %346  ;;  %v353_v45 = vpop.xlane.xlu0 %352 }
 0x18b   : > { %v365_v47 = vmul.f32 0.0625, %v347_v44  ;;  %v367_v48 = vmul.f32 0.0625, %v353_v45  ;;  %v391_v56 = vsel %vm390_vm2, %v389_v50, %v384_v46 }
 0x18d   : > { %v395_v51 = vrot.slane %v365_v47, %v383_v38  ;;  %v404_v52 = vrot.slane %v367_v48, %v383_v38 }
 0x18e   : > { %v362_v54 = vpop.xlane.xlu1 %361  ;;  %v359_v55 = vpop.xlane.xlu0 %358 }
 0x18f   : > { %v400_v57 = vsel %vm390_vm2, %v399_v49, %v395_v51  ;;  %v370_v58 = vmul.f32 0.0625, %v362_v54  ;;  %v369_v59 = vmul.f32 0.0625, %v359_v55  ;;  %v409_v61 = vsel %vm390_vm2, %v408_v53, %v404_v52 }
 0x190   : > { %v420_v60 = vsel %vm419_vm3, %v400_v57, %v391_v56 }
 0x191   : > { %v417_v62 = vrot.slane %v370_v58, %v388_v40  ;;  %v413_v63 = vrot.slane %v369_v59, %v383_v38  ;;  %v422_v0 = vsel %vm421_vm4, %v409_v61, %v420_v60 }
 0x193   : > { %v418_v1 = vsel %vm390_vm2, %v417_v62, %v413_v63 }
 0x194   : > { %v424_v2 = vsel %vm423_vm5, %v418_v1, %v422_v0 }
 0x195   : > { %427 = vst.msk [vmem:[%s222_s21] sm:$0xf] %vm426_vm6, %v424_v2 }
 0x196   : > { %676 = shalt.err (!%p673_p6)
}
 0x197   : > { %s677_s8 = scalar_lea.hbm %s900_s30, 64  ;;  %s681_s10 = scalar_lea.hbm %s945_s3, 128 }
 0x198   : > { %p678_p7 = scmp.ne.s32.totalorder %s900_s30, %s677_s8  ;;  %p682_p13 = scmp.lt.s32.totalorder %s900_s30, %s945_s3 }
 0x199   : > { %p683_p2 = scmp.lt.s32.totalorder %s681_s10, %s677_s8 }
 0x19a   : > { %p679_p10 = pnand %p678_p7, %p820_p9 }
 0x19b   : > { %p684_p8 = por %p683_p2, %p682_p13 }
 0x19c   : > { %p680_p4 = pneg %p679_p10 }
 0x19e   : > { %p685_p12 = pnand %p684_p8, %p680_p4 }
 0x1a0   : > { %688 = shalt.err (!%p685_p12)
}
 0x1a1   : > { %573 = dma.vmem_to_hbm [thread:$0]  (%p820_p9), %s444_s22, 64, %s900_s30, %s429_s4  }
 0x1a2 PF: > { %s455_s18 = sand.u32 1, %s723_s12   ;;  %p951_p0 = scmp.ge.s32.totalorder %s743_s17, 2 }
 0x1a3   : > { %s456_s19 = scalar_lea.sflag [#allocation4], %s455_s18 }
 0x1a4   : > { %p580_p1 = pnand %p951_p0, %p827_p11 }
 0x1a6   : > { %p581_p3 = pneg %p580_p1 }
 0x1a8   : > { %718 = dma.done.wait (%p581_p3), %s456_s19, 64  }
 0x1a9   : > { %720 = vsyncadd (%p581_p3), %s456_s19, 4294967232  ;;  %s19_s17 = sadd.s32 1, %s743_s17   ;;  %s952_s12 = smov %s727_s13 }
 0x1aa   : > { %p16_p5 = scmp.ge.s32.totalorder %s19_s17, 4   ;;  %s953_s13 = smov %s731_s14 }
 0x1ab   : > { %s954_s14 = smov %s825_s26  ;;  %s955_s15 = smov %s739_s16 }
 0x1ac   : > { %s956_s16 = smov %s958_s20  ;;  %18 = sbr.rel (!%p16_p5) target bundleno = 6 (0x6), region = 80 }
 0x1b1   :  { %461 = vsyncpa [#allocation3], 1 }
 0x1b2   :  { %463 = vsyncpa [#allocation3 + $0x1], 1 }
 0x1b3   :  { %464 = vsyncpa [#allocation4], 1 }
 0x1b4   :  { %466 = vsyncpa [#allocation4 + $0x1], 1 }

</bundles_post_ra>
